<compile_context>
chip_gen: v5e
topology: v5e:2x2
jax: 0.10.0
libtpu: 0.0.40
codegen_flags: <defaults>
</compile_context>

<pallas_src>
import jax
import jax.numpy as jnp
from jax.experimental import pallas as pl
from jax.experimental.pallas import tpu as pltpu

_LANE = 128


def _make_attention_kernel(nb):
    """Build a kernel processing nb batch elements per grid step (static unroll)."""

    def kernel(g_ref, x_ref, wg_ref, wx_ref, b_ref, wp_ref, bp_ref, o_ref):
        # g_ref: (nb, F_g, TM), x_ref/o_ref: (nb, F_l, TM) -- channels on
        # sublanes, pixels on lanes.  Weights stay resident across the grid.
        wg = wg_ref[...]          # (F_int, F_g) f32
        wx = wx_ref[...]          # (F_int, F_l) f32
        b = b_ref[...]            # (F_int, 1)   f32 (bg + bx pre-summed)
        wp = wp_ref[...]          # (F_int, 1)   f32
        bp = bp_ref[0, 0]         # scalar in SMEM

        for bi in range(nb):      # nb is small (<=8): cheap static unroll
            # Upcast streams to f32 in-register (v5e VPU has no bf16 math);
            # HBM traffic stays at the (possibly bf16) input dtype.
            g = g_ref[bi].astype(jnp.float32)      # (F_g, TM)
            x = x_ref[bi].astype(jnp.float32)      # (F_l, TM)

            # Both 1x1 convs (+ folded BN) as (F_int, C) @ (C, TM).
            h = (jnp.dot(wg, g, preferred_element_type=jnp.float32)
                 + jnp.dot(wx, x, preferred_element_type=jnp.float32)
                 + b)
            p = jnp.maximum(h, 0.0)                # ReLU

            # psi 1x1 conv to one channel: tiny contraction (K = F_int) done as
            # a VPU multiply + sublane reduce; the kernel is HBM-bound so this
            # is hidden.  Padded lanes of a ragged last tile may hold garbage,
            # but their results are dropped by the masked output store.
            # TODO(synk): if bundle profiling ever shows VALU binding for
            # F_int >= 128, move this onto the MXU as (1, F_int) @ (F_int, TM).
            z = jnp.sum(p * wp, axis=0, keepdims=True) + bp     # (1, TM)
            psi = pl.reciprocal(1.0 + jnp.exp(-z), approx=False)  # exact sigmoid

            o_ref[bi] = (x * psi).astype(o_ref.dtype)  # lane-dense store

    return kernel


def attention_block_pallas(g, x, params, *, tm=8192,
                           vmem_budget_bytes=36 * 1024 * 1024):
    """g, x: NCHW arrays (f32 or bf16). Returns x * psi(g, x) in NCHW, x.dtype."""
    N, F_g, H, W = g.shape
    _, F_l, _, _ = x.shape
    F_int = params["wg"].shape[1]
    HW = H * W

    # Free reshapes: NCHW -> (N, C, H*W).  No HBM transposes anywhere.
    g3 = g.reshape(N, F_g, HW)
    x3 = x.reshape(N, F_l, HW)

    g_bytes = jnp.dtype(g.dtype).itemsize
    x_bytes = jnp.dtype(x.dtype).itemsize
    # Bytes streamed per lane column per batch element: g read + x read + out write.
    col_bytes = F_g * g_bytes + 2 * F_l * x_bytes

    # --- Pixel tile on the lane axis: always a multiple of 128 (ragged last
    # tile is masked by Pallas), capped by the double-buffered VMEM budget.
    if HW < _LANE:
        tm_eff = HW  # degenerate tiny image: full-extent block is fine
    else:
        lanes_full = pl.cdiv(HW, _LANE) * _LANE
        budget_lanes = max(
            _LANE, (vmem_budget_bytes // (2 * col_bytes)) // _LANE * _LANE)
        tm_eff = max(_LANE, min((tm // _LANE) * _LANE, budget_lanes, lanes_full))
    grid_m = pl.cdiv(HW, tm_eff)

    # --- Batch coarsening: when per-step tiles are tiny, process nb images per
    # grid step so each step moves a meaningful amount of data.  Keep nb | N,
    # stay inside the VMEM budget, and keep >=2 grid steps (v7x has 2 TCs).
    nb = 1
    step_bytes = col_bytes * tm_eff
    while (nb < N and nb < 8 and N % (2 * nb) == 0
           and nb * step_bytes < (1 << 20)
           and 2 * (2 * nb) * step_bytes <= vmem_budget_bytes
           and (N // (2 * nb)) * grid_m >= 2):
        nb *= 2

    # Effective (BN-folded) weights, transposed for channels-on-sublane layout;
    # the two projection biases always appear as bg + bx, so pre-sum them.
    wg_t = params["wg"].T.astype(jnp.float32)                 # (F_int, F_g)
    wx_t = params["wx"].T.astype(jnp.float32)                 # (F_int, F_l)
    b_sum = (params["bg"] + params["bx"]).reshape(F_int, 1).astype(jnp.float32)
    wp_col = params["wp"].reshape(F_int, 1).astype(jnp.float32)
    bp = params["bp"].reshape(1, 1).astype(jnp.float32)       # scalar -> SMEM

    # Scoped-VMEM limit: double-buffered streams + (tiny) weights + slack.
    # Stays below v7x's 64 MiB physical VMEM and above v5e/v6e default limits.
    weight_bytes = 4 * (F_int * (F_g + F_l + 2) + 1)
    needed = 2 * nb * step_bytes + 2 * weight_bytes
    vmem_limit = int(min(60 * 2**20, max(32 * 2**20, needed + 8 * 2**20)))

    kernel = _make_attention_kernel(nb)

    out3 = pl.pallas_call(
        kernel,
        out_shape=jax.ShapeDtypeStruct((N, F_l, HW), x.dtype),
        grid_spec=pltpu.PrefetchScalarGridSpec(
            num_scalar_prefetch=0,
            grid=(N // nb, grid_m),
            in_specs=[
                pl.BlockSpec((nb, F_g, tm_eff), lambda n, i: (n, 0, i)),
                pl.BlockSpec((nb, F_l, tm_eff), lambda n, i: (n, 0, i)),
                pl.BlockSpec((F_int, F_g), lambda n, i: (0, 0)),
                pl.BlockSpec((F_int, F_l), lambda n, i: (0, 0)),
                pl.BlockSpec((F_int, 1), lambda n, i: (0, 0)),
                pl.BlockSpec((F_int, 1), lambda n, i: (0, 0)),
                pl.BlockSpec(memory_space=pltpu.MemorySpace.SMEM),  # bp scalar
            ],
            out_specs=pl.BlockSpec((nb, F_l, tm_eff), lambda n, i: (n, 0, i)),
        ),
        compiler_params=pltpu.CompilerParams(
            dimension_semantics=("parallel", "parallel"),
            vmem_limit_bytes=vmem_limit),
    )(g3, x3, wg_t, wx_t, b_sum, wp_col, bp)

    # (N, F_l, H*W) -> NCHW (free reshape).
    return out3.reshape(N, F_l, H, W)


def _fold_bn(w, b, gamma, beta, mean, var, eps=1e-5):
    """Fold inference-mode BatchNorm into a 1x1 conv's weight/bias.

    w: (Cin, Cout) matmul weight, b: (Cout,) bias."""
    scale = gamma / jnp.sqrt(var + eps)
    return w * scale[None, :], (b - mean) * scale + beta


def make_params(key, F_g, F_l, F_int):
    """Deterministic parameter init mirroring Conv2d(k=1) + BatchNorm2d."""
    ks = jax.random.split(key, 6)

    def conv_init(k, cin, cout):
        bound = 1.0 / jnp.sqrt(cin)  # PyTorch kaiming-uniform-ish fan_in bound
        kw, kb = jax.random.split(k)
        w = jax.random.uniform(kw, (cin, cout), jnp.float32, -bound, bound)
        b = jax.random.uniform(kb, (cout,), jnp.float32, -bound, bound)
        return w, b

    def bn_init(k, c):
        # deterministic, non-trivial BN stats so folding is actually exercised
        k1, k2, k3, k4 = jax.random.split(k, 4)
        gamma = 1.0 + 0.1 * jax.random.normal(k1, (c,), jnp.float32)
        beta = 0.1 * jax.random.normal(k2, (c,), jnp.float32)
        mean = 0.1 * jax.random.normal(k3, (c,), jnp.float32)
        var = jnp.abs(1.0 + 0.1 * jax.random.normal(k4, (c,), jnp.float32))
        return gamma, beta, mean, var

    wg, bg = conv_init(ks[0], F_g, F_int)
    wx, bx = conv_init(ks[1], F_l, F_int)
    wp, bp = conv_init(ks[2], F_int, 1)

    wg, bg = _fold_bn(wg, bg, *bn_init(ks[3], F_int))
    wx, bx = _fold_bn(wx, bx, *bn_init(ks[4], F_int))
    wp, bp = _fold_bn(wp, bp, *bn_init(ks[5], 1))

    return {"wg": wg, "bg": bg, "wx": wx, "bx": bx, "wp": wp, "bp": bp}


def attention_block_ref(g, x, params):
    """Pure-JAX reference (same folded-BN inference semantics), f32."""
    N, F_g, H, W = g.shape
    F_l = x.shape[1]
    gm = jnp.transpose(g, (0, 2, 3, 1)).reshape(-1, F_g).astype(jnp.float32)
    xm = jnp.transpose(x, (0, 2, 3, 1)).reshape(-1, F_l).astype(jnp.float32)
    g1 = gm @ params["wg"] + params["bg"]
    x1 = xm @ params["wx"] + params["bx"]
    p = jax.nn.relu(g1 + x1)
    psi = jax.nn.sigmoid(p @ params["wp"] + params["bp"])
    out = xm * psi
    return jnp.transpose(out.reshape(N, H, W, F_l), (0, 3, 1, 2))


if __name__ == "__main__":
    key = jax.random.PRNGKey(0)
    k_g, k_x, k_p = jax.random.split(key, 3)

    # Small shapes consistent with the module: NCHW, F_g = F_l = 4, F_int = 8.
    N, F_g, F_l, F_int, H, W = 2, 4, 4, 8, 16, 16
    g = jax.random.normal(k_g, (N, F_g, H, W), jnp.float32)
    x = jax.random.normal(k_x, (N, F_l, H, W), jnp.float32)
    params = make_params(k_p, F_g, F_l, F_int)

    ref = attention_block_ref(g, x, params)

    # f32 I/O path: matches the PyTorch module's (inference-mode) semantics.
    out_f32 = jax.block_until_ready(attention_block_pallas(g, x, params))
    assert out_f32.shape == x.shape and out_f32.dtype == x.dtype
    assert jnp.allclose(out_f32, ref, atol=1e-5, rtol=5e-3), "f32 mismatch vs reference"

    # bf16 I/O path: halves HBM traffic for the three large streams (the main
    # perf lever for this memory-bound kernel); math stays f32 inside.
    out_bf16 = jax.block_until_ready(
        attention_block_pallas(g.astype(jnp.bfloat16), x.astype(jnp.bfloat16), params))
    assert out_bf16.dtype == jnp.bfloat16
    assert jnp.allclose(out_bf16.astype(jnp.float32), ref, atol=5e-2, rtol=5e-2), \
        "bf16 mismatch vs reference"

    print("KERNEL_OK")
</pallas_src>

<mosaic_0001>
module attributes {stable_mosaic.version = 11 : i64} {
  func.func @kernel(%arg0: i32, %arg1: i32, %arg2: memref<1x4x256xf32, #tpu.memory_space<vmem>>, %arg3: memref<1x4x256xf32, #tpu.memory_space<vmem>>, %arg4: memref<8x4xf32, #tpu.memory_space<vmem>>, %arg5: memref<8x4xf32, #tpu.memory_space<vmem>>, %arg6: memref<8x1xf32, #tpu.memory_space<vmem>>, %arg7: memref<8x1xf32, #tpu.memory_space<vmem>>, %arg8: memref<1x1xf32, #tpu.memory_space<smem>>, %arg9: memref<1x4x256xf32, #tpu.memory_space<vmem>>) attributes {dimension_semantics = [#tpu.dimension_semantics<parallel>, #tpu.dimension_semantics<parallel>], iteration_bounds = array<i64: 2, 1>, scalar_prefetch = 0 : i64, scratch_operands = 0 : i64, tpu.core_type = #tpu.core_type<tc>, window_params = [{transform_indices = @transform_0, window_bounds = array<i64: 1, 4, 256>}, {transform_indices = @transform_1, window_bounds = array<i64: 1, 4, 256>}, {pipeline_mode = #tpu.pipeline_mode<synchronous>, transform_indices = @transform_2, window_bounds = array<i64: 8, 4>}, {pipeline_mode = #tpu.pipeline_mode<synchronous>, transform_indices = @transform_3, window_bounds = array<i64: 8, 4>}, {pipeline_mode = #tpu.pipeline_mode<synchronous>, transform_indices = @transform_4, window_bounds = array<i64: 8, 1>}, {pipeline_mode = #tpu.pipeline_mode<synchronous>, transform_indices = @transform_5, window_bounds = array<i64: 8, 1>}, {transform_indices = @transform_6, window_bounds = array<i64: 1, 1>}, {transform_indices = @transform_7, window_bounds = array<i64: 1, 4, 256>}]} {
    %c0 = arith.constant 0 : index
    %c0_0 = arith.constant 0 : index
    %0 = vector.load %arg4[%c0, %c0_0] : memref<8x4xf32, #tpu.memory_space<vmem>>, vector<8x4xf32>
    %c0_1 = arith.constant 0 : index
    %c0_2 = arith.constant 0 : index
    %1 = vector.load %arg5[%c0_1, %c0_2] : memref<8x4xf32, #tpu.memory_space<vmem>>, vector<8x4xf32>
    %c0_3 = arith.constant 0 : index
    %c0_4 = arith.constant 0 : index
    %2 = vector.load %arg6[%c0_3, %c0_4] : memref<8x1xf32, #tpu.memory_space<vmem>>, vector<8x1xf32>
    %c0_5 = arith.constant 0 : index
    %c0_6 = arith.constant 0 : index
    %3 = vector.load %arg7[%c0_5, %c0_6] : memref<8x1xf32, #tpu.memory_space<vmem>>, vector<8x1xf32>
    %c0_7 = arith.constant 0 : index
    %c0_8 = arith.constant 0 : index
    %4 = memref.load %arg8[%c0_7, %c0_8] : memref<1x1xf32, #tpu.memory_space<smem>>
    %c0_9 = arith.constant 0 : index
    %c0_10 = arith.constant 0 : index
    %c0_11 = arith.constant 0 : index
    %5 = vector.load %arg2[%c0_9, %c0_10, %c0_11] : memref<1x4x256xf32, #tpu.memory_space<vmem>>, vector<1x4x256xf32>
    %6 = vector.shape_cast %5 : vector<1x4x256xf32> to vector<4x256xf32>
    %c0_12 = arith.constant 0 : index
    %c0_13 = arith.constant 0 : index
    %c0_14 = arith.constant 0 : index
    %7 = vector.load %arg3[%c0_12, %c0_13, %c0_14] : memref<1x4x256xf32, #tpu.memory_space<vmem>>, vector<1x4x256xf32>
    %8 = vector.shape_cast %7 : vector<1x4x256xf32> to vector<4x256xf32>
    %cst = arith.constant dense<0.000000e+00> : vector<8x256xf32>
    %9 = tpu.matmul %0, %6, %cst {dimension_numbers = #tpu.dot_dimension_numbers<[1], [0], [0], [1], [0, 0, 1, 1], [], []>} : vector<8x4xf32>, vector<4x256xf32>, vector<8x256xf32> -> vector<8x256xf32>
    %cst_15 = arith.constant dense<0.000000e+00> : vector<8x256xf32>
    %10 = tpu.matmul %1, %8, %cst_15 {dimension_numbers = #tpu.dot_dimension_numbers<[1], [0], [0], [1], [0, 0, 1, 1], [], []>} : vector<8x4xf32>, vector<4x256xf32>, vector<8x256xf32> -> vector<8x256xf32>
    %11 = arith.addf %9, %10 : vector<8x256xf32>
    %12 = vector.broadcast %2 : vector<8x1xf32> to vector<8x256xf32>
    %13 = arith.addf %11, %12 : vector<8x256xf32>
    %cst_16 = arith.constant 0.000000e+00 : f32
    %14 = vector.broadcast %cst_16 : f32 to vector<8x256xf32>
    %15 = arith.maximumf %13, %14 : vector<8x256xf32>
    %16 = vector.broadcast %3 : vector<8x1xf32> to vector<8x256xf32>
    %17 = arith.mulf %15, %16 : vector<8x256xf32>
    %cst_17 = arith.constant dense<0.000000e+00> : vector<256xf32>
    %18 = vector.multi_reduction <add>, %17, %cst_17 [0] : vector<8x256xf32> to vector<256xf32>
    %19 = vector.shape_cast %18 : vector<256xf32> to vector<1x256xf32>
    %20 = vector.broadcast %4 : f32 to vector<1x256xf32>
    %21 = arith.addf %19, %20 : vector<1x256xf32>
    %cst_18 = arith.constant 0.000000e+00 : f32
    %22 = vector.broadcast %cst_18 : f32 to vector<1x256xf32>
    %23 = arith.subf %22, %21 : vector<1x256xf32>
    %24 = math.exp %23 : vector<1x256xf32>
    %cst_19 = arith.constant 1.000000e+00 : f32
    %25 = vector.broadcast %cst_19 : f32 to vector<1x256xf32>
    %26 = arith.addf %25, %24 : vector<1x256xf32>
    %27 = tpu.reciprocal %26 : vector<1x256xf32> -> vector<1x256xf32>
    %28 = vector.broadcast %27 : vector<1x256xf32> to vector<4x256xf32>
    %29 = arith.mulf %8, %28 : vector<4x256xf32>
    %c0_20 = arith.constant 0 : index
    %c0_21 = arith.constant 0 : index
    %c0_22 = arith.constant 0 : index
    %30 = vector.load %arg9[%c0_20, %c0_21, %c0_22] : memref<1x4x256xf32, #tpu.memory_space<vmem>>, vector<1x4x256xf32>
    %31 = vector.shape_cast %30 : vector<1x4x256xf32> to vector<4x256xf32>
    %32 = vector.shape_cast %29 : vector<4x256xf32> to vector<1x4x256xf32>
    tpu.vector_store %arg9[%c0_20, %c0_21, %c0_22], %32 {strides = array<i32>} : memref<1x4x256xf32, #tpu.memory_space<vmem>>, vector<1x4x256xf32>,
    return
  }
  func.func @transform_0(%arg0: i32, %arg1: i32) -> (i32, i32, i32) {
    %c0_i32 = arith.constant 0 : i32
    %c0_i32_0 = arith.constant 0 : i32
    return %arg0, %c0_i32, %arg1 : i32, i32, i32
  }
  func.func @transform_1(%arg0: i32, %arg1: i32) -> (i32, i32, i32) {
    %c0_i32 = arith.constant 0 : i32
    %c0_i32_0 = arith.constant 0 : i32
    return %arg0, %c0_i32, %arg1 : i32, i32, i32
  }
  func.func @transform_2(%arg0: i32, %arg1: i32) -> (i32, i32) {
    %c0_i32 = arith.constant 0 : i32
    %c0_i32_0 = arith.constant 0 : i32
    %c0_i32_1 = arith.constant 0 : i32
    return %c0_i32, %c0_i32_0 : i32, i32
  }
  func.func @transform_3(%arg0: i32, %arg1: i32) -> (i32, i32) {
    %c0_i32 = arith.constant 0 : i32
    %c0_i32_0 = arith.constant 0 : i32
    %c0_i32_1 = arith.constant 0 : i32
    return %c0_i32, %c0_i32_0 : i32, i32
  }
  func.func @transform_4(%arg0: i32, %arg1: i32) -> (i32, i32) {
    %c0_i32 = arith.constant 0 : i32
    %c0_i32_0 = arith.constant 0 : i32
    %c0_i32_1 = arith.constant 0 : i32
    return %c0_i32, %c0_i32_0 : i32, i32
  }
  func.func @transform_5(%arg0: i32, %arg1: i32) -> (i32, i32) {
    %c0_i32 = arith.constant 0 : i32
    %c0_i32_0 = arith.constant 0 : i32
    %c0_i32_1 = arith.constant 0 : i32
    return %c0_i32, %c0_i32_0 : i32, i32
  }
  func.func @transform_6(%arg0: i32, %arg1: i32) -> (i32, i32) {
    %c0_i32 = arith.constant 0 : i32
    %c0_i32_0 = arith.constant 0 : i32
    %c0_i32_1 = arith.constant 0 : i32
    return %c0_i32, %c0_i32_0 : i32, i32
  }
  func.func @transform_7(%arg0: i32, %arg1: i32) -> (i32, i32, i32) {
    %c0_i32 = arith.constant 0 : i32
    %c0_i32_0 = arith.constant 0 : i32
    return %arg0, %c0_i32, %arg1 : i32, i32, i32
  }
}

</mosaic_0001>

<bundles_post_ra>
// kernel: tpu_custom_call.1
= control target key start
LH: loop header
LB: loop body
LE: loop exit
PB: predicated region body
PF: predicated region fallthrough
CT: control target
= control target key end

     0   :  { %s1074_s0 = inlined_call_operand.vmem [shape: f32[2,4,256], index: 0, kind: input, shape index: {}]   ;;  %s1075_s1 = inlined_call_operand.hbm [shape: f32[2,4,256], index: 1, kind: input, shape index: {}]   ;;  %s1076_s2 = inlined_call_operand.vmem [shape: f32[8,4], index: 2, kind: input, shape index: {}]   ;;  %s1077_s3 = inlined_call_operand.vmem [shape: f32[8,4], index: 3, kind: input, shape index: {}]   ;;  %s1078_s4 = inlined_call_operand.vmem [shape: f32[8,1], index: 4, kind: input, shape index: {}]   ;;  %s1079_s5 = inlined_call_operand.vmem [shape: f32[8,1], index: 5, kind: input, shape index: {}]   ;;  %s1080_s6 = inlined_call_operand.<no memory space> [shape: f32[1,1], index: 6, kind: input, shape index: {}]   ;;  %s1081_s7 = inlined_call_operand.hbm [shape: f32[2,4,256], index: 7, kind: output, shape index: {}]  }
   0x1   :  { %12 = sst [smem:[#allocation2]] %s1080_s6 }
   0x2   :  { %13 = vsyncpa [#allocation4], 0 }
   0x3   :  { %15 = vsyncpa [#allocation4 + $0x1], 0 }
   0x4   :  { %16 = vsyncpa [#allocation5], 0 }
   0x5   :  { %18 = vsyncpa [#allocation5 + $0x1], 0  ;;  %s918_s26 = smov 0   ;;  %s920_s27 = smov 0  }
   0x6   :  { %s922_s28 = smov 0   ;;  %s924_s29 = smov 0  }
   0x7   :  { %s926_s30 = smov 0   ;;  %s928_s8 = smov 0  }
   0x8 LB: > { %s660_s6 = sadd.s32 4294967295, %s872_s8   ;;  %s661_s9 = sadd.s32 4294967294, %s872_s8   ;;  %s872_s8 = sphi %s928_s8, %s24_s8   ;;  %s868_s30 = sphi %s926_s30, %s1092_s30   ;;  %s864_s29 = sphi %s924_s29, %s1091_s29   ;;  %s860_s28 = sphi %s922_s28, %s1090_s28   ;;  %s856_s27 = sphi %s920_s27, %s1089_s27   ;;  %s852_s26 = sphi %s918_s26, %s1088_s26  }
   0x9   : > { %s36_s10 = sadd.s32 1, %s868_s30  ;;  %s73_s11 = sadd.s32 1, %s860_s28 }
   0xa   : > { %p38_p0 = scmp.ge.s32.totalorder %s36_s10, 2  ;;  %p80_p1 = scmp.ne.s32.totalorder %s860_s28, %s856_s27 }
   0xb   : > { %p81_p2 = scmp.eq.s32.totalorder %s872_s8, 0  ;;  %p86_p3 = scmp.ne.s32.totalorder %s856_s27, %s852_s26 }
   0xc   : > { %s1094_s10 = smov (%p38_p0, %s36_s10), 0  ;;  %p87_p5 = scmp.eq.s32.totalorder %s660_s6, 0 }
   0xd   : > { %p959_p4 = por %p81_p2, %p80_p1  ;;  %s68_s13 = ssub.s32 %s868_s30, %s1094_s10 }
   0xe   : > { %p217_p6 = scmp.eq.s32.totalorder %s660_s6, 1  ;;  %p71_p7 = scmp.eq.s32.totalorder %s68_s13, 0 }
   0xf   : > { %p965_p8 = por %p87_p5, %p86_p3  ;;  %p223_p10 = scmp.eq.s32.totalorder %s661_s9, 1 }
  0x10   : > { %p969_p9 = por %p217_p6, %p80_p1  ;;  %p663_p12 = scmp.ge.s32.totalorder %s872_s8, 2 }
  0x11   : > { %s974_s16 = scalar_select %p71_p7, %s860_s28, %s73_s11  }
  0x12   : > { %p976_p11 = por %p223_p10, %p86_p3  ;;  %p700_p13 = scmp.lt.s32.totalorder %s872_s8, 2 }
  0x13   : > { %s271_s18 = sand.u32 1, %s860_s28   ;;  %s685_s20 = sshll.u32 %s868_s30, 3 }
  0x14   : > { %s664_s19 = sshll.u32 %s271_s18, 3  ;;  %s282_s23 = scalar_lea.hbm %s1075_s1, %s685_s20 }
  0x15   : > { %s275_s24 = scalar_lea.vmem [#allocation3], %s664_s19  ;;  %s284_s6 = sshll.u32 %s282_s23, 4  ;;  %s285_s6 = int_to_ptr.hbm [resolvable:$true] %s284_s6 }
  0x16   : > { %s286_s25 = sshll.u32 %s275_s24, 4  ;;  %p693_p0 = pnand %p700_p13, %p959_p4  ;;  %s287_s25 = int_to_ptr.vmem [resolvable:$true] %s286_s25 }
  0x17   : > { %p667_p1 = scmp.ge.s32.totalorder %s872_s8, 1  ;;  %p291_p2 = scmp.lt.s32.totalorder %s872_s8, 3 }
  0x18   : > { %s272_s9 = scalar_lea.sflag [#allocation4], %s271_s18 }
  0x19   : > { %695 = dma.hbm_to_vmem [thread:$0]  (!%p693_p0), %s285_s6, 128, %s287_s25, %s272_s9  }
  0x1a   : > { %p292_p3 = pnand %p667_p1, %p291_p2 }
  0x1b   : > { %s992_s11 = sand.u32 (!%p292_p3), 1, %s856_s27  }
  0x1c   : > { %295 = sbr.rel (%p292_p3) target bundleno = 245 (0xf5), region = 48  ;;  %s668_s13 = sshll.u32 (!%p292_p3), %s992_s11, 3 }
  0x1d   : > { %s298_s19 = scalar_lea.sflag (!%p292_p3), [#allocation4], %s992_s11  ;;  %s301_s20 = scalar_lea.vmem (!%p292_p3), [#allocation3], %s668_s13 }
  0x21   : > { %843 = dma.done.wait (%p965_p8), %s298_s19, 128  }
  0x22   : > { %845 = vsyncadd (%p965_p8), %s298_s19, 4294967168  ;;  %p343_p4 = scmp.lt.s32.totalorder %s864_s29, 1  ;;  %v874_v0 = vmov 0   ;;  %v1004_v1 = vld [vmem:[%s301_s20] sm:$0xff]  ;;  %v356_v2 = vld [vmem:[%s1078_s4] sm:$0xff]  ;;  %vm369_vm0 = vcmask 1043456  }
  0x23   : > { %751 = vset.pattern.permute.xlu0 %v874_v0  ;;  %362 = vst [vmem:[#allocation1] ss:$2 sm:$0xff] %v1004_v1  ;;  %v355_v4 = vld [vmem:[%s1077_s3] sm:$0xff]  ;;  %vm365_vm1 = vcmask 31744   ;;  %s687_s21 = sshll.u32 %s864_s29, 3  ;;  %s540_s6 = scalar_lea.sflag [#allocation5], %s992_s11 }
  0x24   : > { %s344_s12 = scalar_select %p343_p4, %s864_s29, 1  ;;  %467 = vperm.xlu0 %751, %v356_v2   ;;  %v357_v5 = vld [vmem:[%s1079_s5] sm:$0xff] }
  0x25   : > { %v354_v8 = vld [vmem:[%s1076_s2] sm:$0xff]  ;;  %s553_s24 = scalar_lea.hbm %s1081_s7, %s687_s21  ;;  %s341_s29 = scalar_lea.vmem [#allocation6], %s668_s13 }
  0x26   : > { %s686_s18 = sshll.u32 %s344_s12, 3  ;;  %s557_s25 = sshll.u32 %s553_s24, 4  ;;  %s558_s25 = int_to_ptr.hbm [resolvable:$true] %s557_s25 }
  0x27   : > { %s350_s14 = scalar_lea.vmem %s1074_s0, %s686_s18  ;;  %s358_s18 = sld [smem:[#allocation2]] }
  0x28   : > { %v359_v3 = vld [vmem:[%s350_s14] sm:$0xff]  ;;  %s555_s14 = sshll.u32 %s341_s29, 4  ;;  %s804_s9 = sshra.s32 %s558_s25, 4  ;;  %s556_s14 = int_to_ptr.vmem [resolvable:$true] %s555_s14  ;;  %s805_s9 = int_to_ptr.hbm [resolvable:$true] %s804_s9 }
  0x29   : > { %s806_s19 = scalar_lea.hbm %s805_s9, 8  ;;  %s810_s12 = scalar_lea.hbm %s1081_s7, 16 }
  0x2a   : > { %v363_v6 = vld.sshfl [vmem:[#allocation1] sm:$0xff pattern:$0x75316420]  ;;  %v364_v7 = vld.sshfl [vmem:[#allocation1 + $0x8] sm:$0xff pattern:$0x75316420]  ;;  %p807_p5 = scmp.ne.s32.totalorder %s805_s9, %s806_s19  ;;  %p811_p8 = scmp.lt.s32.totalorder %s805_s9, %s1081_s7 }
  0x2b   : > { %415 = vst [vmem:[#allocation1] ss:$2 sm:$0xff] %v359_v3  ;;  %672 = vmatpush.msk.msra.mxu0 %vm369_vm0, %v363_v6  ;;  %674 = vmatpush.msk.msra.mxu1 %vm369_vm0, %v364_v7  ;;  %p812_p10 = scmp.lt.s32.totalorder %s810_s12, %s806_s19 }
  0x2c   : > { %673 = vmatmul.msk.f32.vlgmr.msra.gmra.mxu0 %vm365_vm1, %v355_v4  ;;  %675 = vmatmul.msk.f32.vlgmr.msra.gmra.mxu1 %vm365_vm1, %v355_v4  ;;  %p808_p6 = pnand %p807_p5, %p969_p9 }
  0x2d   : > { %476 = vperm.xlu0 %751, %v357_v5   ;;  %v493_v35 = vstv %s358_s18  ;;  %p813_p13 = por %p812_p10, %p811_p8 }
  0x2e   : > { %p809_p7 = pneg %p808_p6 }
  0x30   : > { %p814_p0 = pnand %p813_p13, %p809_p7 }
  0x32   : > { %v416_v9 = vld.sshfl [vmem:[#allocation1] sm:$0xff pattern:$0x75316420]  ;;  %v417_v10 = vld.sshfl [vmem:[#allocation1 + $0x8] sm:$0xff pattern:$0x75316420] }
  0x33   : > { %676 = vmatpush.msk.msra.mxu2 %vm369_vm0, %v416_v9  ;;  %678 = vmatpush.msk.msra.mxu3 %vm369_vm0, %v417_v10 }
  0x34   : > { %677 = vmatmul.msk.f32.vlgmr.msra.gmra.mxu2 %vm365_vm1, %v354_v8  ;;  %679 = vmatmul.msk.f32.vlgmr.msra.gmra.mxu3 %vm365_vm1, %v354_v8 }
  0x96   : > { %v468_v11 = vpop.permute.xlu0 %467 }
  0x9f   : > { %v477_v22 = vpop.permute.xlu0 %476 }
  0xa9   : > { %v391_v12 = vpop.f32.mrf.mxu0  ;;  %v411_v13 = vpop.f32.mrf.mxu1 }
  0xb7   : > { %v442_v14 = vpop.f32.mrf.mxu2  ;;  %v462_v15 = vpop.f32.mrf.mxu3 }
  0xb8   : > { %v443_v16 = vadd.f32 %v442_v14, %v391_v12  ;;  %v463_v17 = vadd.f32 %v462_v15, %v411_v13 }
  0xba   : > { %v470_v18 = vadd.f32 %v468_v11, %v443_v16  ;;  %v471_v19 = vadd.f32 %v468_v11, %v463_v17 }
  0xbc   : > { %v472_v20 = vmax.f32 %v470_v18, 0.0  ;;  %v473_v21 = vmax.f32 %v471_v19, 0.0 }
  0xbe   : > { %v479_v23 = vmul.f32 %v477_v22, %v472_v20  ;;  %v480_v24 = vmul.f32 %v477_v22, %v473_v21 }
  0xc0   : > { %v481_v25 = vrot.slane %v479_v23, 4  ;;  %v487_v26 = vrot.slane %v480_v24, 4 }
  0xc2   : > { %v482_v27 = vadd.f32 %v481_v25, %v479_v23  ;;  %v488_v28 = vadd.f32 %v487_v26, %v480_v24 }
  0xc4   : > { %v483_v29 = vrot.slane %v482_v27, 2  ;;  %v489_v30 = vrot.slane %v488_v28, 2 }
  0xc6   : > { %v484_v31 = vadd.f32 %v483_v29, %v482_v27  ;;  %v490_v32 = vadd.f32 %v489_v30, %v488_v28 }
  0xc8   : > { %v485_v33 = vrot.slane %v484_v31, 1  ;;  %v491_v34 = vrot.slane %v490_v32, 1 }
  0xca   : > { %v486_v36 = vadd.f32 %v485_v33, %v484_v31  ;;  %v492_v37 = vadd.f32 %v491_v34, %v490_v32 }
  0xcc   : > { %v494_v38 = vadd.f32 %v493_v35, %v486_v36  ;;  %v495_v39 = vadd.f32 %v493_v35, %v492_v37 }
  0xce   : > { %v496_v40 = vsub.f32 0.0, %v494_v38  ;;  %v497_v41 = vsub.f32 0.0, %v495_v39 }
  0xd0   : > { %v498_v42 = vmul.f32 1.442695, %v496_v40  ;;  %v500_v43 = vmul.f32 1.442695, %v497_v41 }
  0xd2   : > { %752 = vpow2.f32 %v498_v42 }
  0xd3   : > { %754 = vpow2.f32 %v500_v43 }
  0xd8   : > { %v753_v44 = vpop.eup %752 }
  0xd9   : > { %v755_v45 = vpop.eup %754  ;;  %v502_v46 = vadd.f32 1.0, %v753_v44 }
  0xda   : > { %v503_v47 = vadd.f32 1.0, %v755_v45 }
  0xdb   : > { %756 = vrcp.f32 %v502_v46  ;;  %vm509_vm4 = vweird.f32 %v502_v46  ;;  %v515_v59 = vand.u32 2147483648, %v502_v46  ;;  %v513_v61 = vand.u32 2147483647, %v502_v46 }
  0xdc   : > { %758 = vrcp.f32 %v503_v47  ;;  %v529_v55 = vand.u32 2147483648, %v503_v47  ;;  %v527_v57 = vand.u32 2147483647, %v503_v47  ;;  %vm523_vm6 = vweird.f32 %v503_v47 }
  0xdd   : > { %v516_v3 = vor.u32 1.1754944e-38, %v515_v59  ;;  %vm514_vm9 = vcmp.eq.f32.partialorder %v513_v61, 8.507059e+37 }
  0xde   : > { %v530_v63 = vor.u32 1.1754944e-38, %v529_v55  ;;  %vm528_vm8 = vcmp.eq.f32.partialorder %v527_v57, 8.507059e+37 }
  0xe1   : > { %v757_v48 = vpop.eup %756 }
  0xe2   : > { %v759_v49 = vpop.eup %758  ;;  %v505_v50 = vmul.f32 %v757_v48, %v502_v46  ;;  %vm510_vm2 = vweird.f32 %v757_v48 }
  0xe3   : > { %v519_v51 = vmul.f32 %v759_v49, %v503_v47  ;;  %vm524_vm3 = vweird.f32 %v759_v49  ;;  %vm1027_vm5 = vmor %vm509_vm4, %vm510_vm2 }
  0xe4   : > { %v506_v52 = vsub.f32 1.0, %v505_v50  ;;  %vm525_vm7 = vmor %vm523_vm6, %vm524_vm3 }
  0xe5   : > { %v520_v53 = vsub.f32 1.0, %v519_v51 }
  0xe6   : > { %v507_v54 = vmul.f32 %v757_v48, %v506_v52 }
  0xe7   : > { %v521_v56 = vmul.f32 %v759_v49, %v520_v53 }
  0xe8   : > { %v508_v58 = vadd.f32 %v757_v48, %v507_v54 }
  0xe9   : > { %v522_v62 = vadd.f32 %v759_v49, %v521_v56 }
  0xea   : > { %v512_v0 = vsel %vm1027_vm5, %v757_v48, %v508_v58 }
  0xeb   : > { %v526_v2 = vsel %vm525_vm7, %v759_v49, %v522_v62  ;;  %v517_v6 = vsel %vm514_vm9, %v516_v3, %v512_v0 }
  0xec   : > { %v531_v4 = vsel %vm528_vm8, %v530_v63, %v526_v2 }
  0xed   : > { %v534_v5 = vrot.slane %v531_v4, 4 }
  0xef   : > { %v535_v7 = vsel %vm369_vm0, %v517_v6, %v534_v5 }
  0xf0   : > { %v537_v8 = vmul.f32 %v535_v7, %v1004_v1 }
  0xf2   : > { %538 = vst [vmem:[%s341_s29] sm:$0xff] %v537_v8 }
  0xf3   : > { %817 = shalt.err (!%p814_p0)
}
  0xf4   : > { %690 = dma.vmem_to_hbm [thread:$0]  (%p969_p9), %s556_s14, 128, %s558_s25, %s540_s6  }
  0xf5 PF: > { %s569_s11 = sand.u32 1, %s852_s26   ;;  %p697_p1 = pnand %p663_p12, %p976_p11 }
  0xf6   : > { %s570_s22 = scalar_lea.sflag [#allocation5], %s569_s11 }
  0xf7   : > { %p698_p2 = pneg %p697_p1 }
  0xf9   : > { %847 = dma.done.wait (%p698_p2), %s570_s22, 128  }
  0xfa   : > { %849 = vsyncadd (%p698_p2), %s570_s22, 4294967168  ;;  %s24_s8 = sadd.s32 1, %s872_s8   ;;  %s1088_s26 = smov %s856_s27 }
  0xfb   : > { %p21_p3 = scmp.ge.s32.totalorder %s24_s8, 4   ;;  %s1089_s27 = smov %s860_s28 }
  0xfc   : > { %s1090_s28 = smov %s974_s16  ;;  %s1091_s29 = smov %s868_s30 }
  0xfd   : > { %s1092_s30 = smov %s1094_s10  ;;  %23 = sbr.rel (!%p21_p3) target bundleno = 8 (0x8), region = 96 }
 0x102   :  { %576 = vsyncpa [#allocation4], 1 }
 0x103   :  { %578 = vsyncpa [#allocation4 + $0x1], 1 }
 0x104   :  { %579 = vsyncpa [#allocation5], 1 }
 0x105   :  { %581 = vsyncpa [#allocation5 + $0x1], 1 }

</bundles_post_ra>
